<compile_context>
chip_gen: v7x
topology: tpu7x:2x2x1
jax: 0.10.0
libtpu: 0.0.40
codegen_flags: <defaults>
</compile_context>

<pallas_src>
import jax
import jax.numpy as jnp
from jax.experimental import pallas as pl
from jax.experimental.pallas import tpu as pltpu

LANE = 128


def _round_up(x, m):
    return (x + m - 1) // m * m


def pitch_decoder_kernel(z_ref, w1_ref, b1_ref, w2_ref, b2_ref, out_ref):
    # Linear 1 + ReLU (MXU matmul, f32 accumulation).  Padded z columns and
    # padded W1 rows/cols are zero, b1 padding is zero, so padded h cols are 0.
    h = jnp.dot(z_ref[...], w1_ref[...], preferred_element_type=jnp.float32)
    h = jnp.maximum(h + b1_ref[...], 0.0)

    # Linear 2.  Padded h columns are exactly 0; padded W2 columns are 0 and
    # carry a -1e30 bias, so padded logits vanish under the softmax below.
    logits = jnp.dot(h.astype(w2_ref.dtype), w2_ref[...],
                     preferred_element_type=jnp.float32)
    logits = logits + b2_ref[...]

    # Numerically stable softmax over the last (lane) axis.
    m = jnp.max(logits, axis=-1, keepdims=True)
    e = jnp.exp(logits - m)
    denom = jnp.sum(e, axis=-1, keepdims=True)
    inv = pl.reciprocal(denom, approx=True)   # EUP slot (free vs VALU divide)
    inv = inv * (2.0 - denom * inv)           # one Newton step -> full f32 accuracy
    out_ref[...] = (e * inv).astype(out_ref.dtype)


def _pad_params(w1, b1, w2, b2, matmul_dtype):
    """Pad parameters to lane-aligned shapes (do this once, not per call)."""
    z_dim, h_dim = w1.shape
    one_hot = w2.shape[1]
    zp = _round_up(z_dim, LANE)
    hp = _round_up(h_dim, LANE)
    op = _round_up(one_hot, LANE)
    wdt = matmul_dtype if matmul_dtype is not None else w1.dtype

    w1p = jnp.zeros((zp, hp), wdt).at[:z_dim, :h_dim].set(w1.astype(wdt))
    w2p = jnp.zeros((hp, op), wdt).at[:h_dim, :one_hot].set(w2.astype(wdt))
    b1p = jnp.zeros((1, hp), jnp.float32).at[:, :h_dim].set(
        jnp.reshape(b1, (1, h_dim)).astype(jnp.float32))
    # Padded logit columns get a huge negative bias -> exp() == 0 -> no mass.
    b2p = jnp.full((1, op), -1e30, jnp.float32).at[:, :one_hot].set(
        jnp.reshape(b2, (1, one_hot)).astype(jnp.float32))
    return w1p, b1p, w2p, b2p


def pitch_decoder(z, w1, b1, w2, b2, *, block_b=1024, matmul_dtype=None):
    """z: [B, z_dim] -> softmax probabilities [B, one_hot_size]."""
    B, z_dim = z.shape
    h_dim = w1.shape[1]
    one_hot = w2.shape[1]

    w1p, b1p, w2p, b2p = _pad_params(w1, b1, w2, b2, matmul_dtype)
    ZP, HP = w1p.shape
    OP = w2p.shape[1]

    # Batch tiling: pad B up to a multiple of the batch tile (sublane mult of 8).
    tb = min(block_b, _round_up(B, 8))
    bp = _round_up(B, tb)
    zdt = matmul_dtype if matmul_dtype is not None else z.dtype
    z_pad = jnp.zeros((bp, ZP), zdt).at[:B, :z_dim].set(z.astype(zdt))

    itemsize = jnp.dtype(zdt).itemsize
    cost = pl.CostEstimate(
        flops=2 * B * (z_dim * h_dim + h_dim * one_hot),
        transcendentals=B * one_hot,
        bytes_accessed=int(z_pad.size * itemsize
                           + (w1p.size + w2p.size) * itemsize
                           + (b1p.size + b2p.size) * 4
                           + bp * OP * 4),
    )

    out = pl.pallas_call(
        pitch_decoder_kernel,
        out_shape=jax.ShapeDtypeStruct((bp, OP), jnp.float32),
        grid_spec=pltpu.PrefetchScalarGridSpec(
            num_scalar_prefetch=0,
            grid=(bp // tb,),
            in_specs=[
                pl.BlockSpec((tb, ZP), lambda i: (i, 0)),   # z tile, pipelined over batch
                pl.BlockSpec((ZP, HP), lambda i: (0, 0)),   # W1 (VMEM-resident)
                pl.BlockSpec((1, HP), lambda i: (0, 0)),    # b1 (VMEM-resident)
                pl.BlockSpec((HP, OP), lambda i: (0, 0)),   # W2 (VMEM-resident)
                pl.BlockSpec((1, OP), lambda i: (0, 0)),    # b2 (VMEM-resident)
            ],
            out_specs=pl.BlockSpec((tb, OP), lambda i: (i, 0)),
        ),
        compiler_params=pltpu.CompilerParams(
            dimension_semantics=("parallel",),  # megacore: both TCs split the batch
        ),
        cost_estimate=cost,
    )(z_pad, w1p, b1p, w2p, b2p)

    # Strip batch + lane padding outside the kernel (cheap XLA slice).
    return out[:B, :one_hot]


def init_params(key, one_hot_size=130, h_dim=40, z_dim=20):
    """Deterministic init mimicking PyTorch's Linear default (uniform +-1/sqrt(fan_in))."""
    k1, k2, k3, k4 = jax.random.split(key, 4)
    lim1 = 1.0 / jnp.sqrt(z_dim)
    lim2 = 1.0 / jnp.sqrt(h_dim)
    w1 = jax.random.uniform(k1, (z_dim, h_dim), jnp.float32, -lim1, lim1)
    b1 = jax.random.uniform(k2, (1, h_dim), jnp.float32, -lim1, lim1)
    w2 = jax.random.uniform(k3, (h_dim, one_hot_size), jnp.float32, -lim2, lim2)
    b2 = jax.random.uniform(k4, (1, one_hot_size), jnp.float32, -lim2, lim2)
    return w1, b1, w2, b2


if __name__ == "__main__":
    one_hot_size, h_dim, z_dim = 130, 40, 20
    batch = 8

    key = jax.random.PRNGKey(0)
    kz, kp = jax.random.split(key)
    z = jax.random.normal(kz, (batch, z_dim), jnp.float32)
    w1, b1, w2, b2 = init_params(kp, one_hot_size, h_dim, z_dim)

    out = pitch_decoder(z, w1, b1, w2, b2)   # f32 path matches PyTorch semantics
    out = jax.block_until_ready(out)

    # Sanity check against a pure-JAX reference.
    h_ref = jnp.maximum(z @ w1 + b1, 0.0)
    ref = jax.nn.softmax(h_ref @ w2 + b2, axis=-1)
    assert out.shape == (batch, one_hot_size)
    assert jnp.allclose(out, ref, atol=1e-5, rtol=1e-5)
    assert jnp.allclose(jnp.sum(out, axis=-1), 1.0, atol=1e-5)

    print("KERNEL_OK")
</pallas_src>

<mosaic_0001>
module attributes {stable_mosaic.version = 11 : i64} {
  func.func @pitch_decoder_kernel(%arg0: i32, %arg1: memref<8x128xf32, #tpu.memory_space<vmem>>, %arg2: memref<128x128xf32, #tpu.memory_space<vmem>>, %arg3: memref<1x128xf32, #tpu.memory_space<vmem>>, %arg4: memref<128x256xf32, #tpu.memory_space<vmem>>, %arg5: memref<1x256xf32, #tpu.memory_space<vmem>>, %arg6: memref<8x256xf32, #tpu.memory_space<vmem>>) attributes {dimension_semantics = [#tpu.dimension_semantics<parallel>], iteration_bounds = array<i64: 1>, scalar_prefetch = 0 : i64, scratch_operands = 0 : i64, tpu.core_type = #tpu.core_type<tc>, window_params = [{transform_indices = @transform_0, window_bounds = array<i64: 8, 128>}, {pipeline_mode = #tpu.pipeline_mode<synchronous>, transform_indices = @transform_1, window_bounds = array<i64: 128, 128>}, {pipeline_mode = #tpu.pipeline_mode<synchronous>, transform_indices = @transform_2, window_bounds = array<i64: 1, 128>}, {pipeline_mode = #tpu.pipeline_mode<synchronous>, transform_indices = @transform_3, window_bounds = array<i64: 128, 256>}, {pipeline_mode = #tpu.pipeline_mode<synchronous>, transform_indices = @transform_4, window_bounds = array<i64: 1, 256>}, {transform_indices = @transform_5, window_bounds = array<i64: 8, 256>}]} {
    %c0 = arith.constant 0 : index
    %c0_0 = arith.constant 0 : index
    %0 = vector.load %arg1[%c0, %c0_0] : memref<8x128xf32, #tpu.memory_space<vmem>>, vector<8x128xf32>
    %c0_1 = arith.constant 0 : index
    %c0_2 = arith.constant 0 : index
    %1 = vector.load %arg2[%c0_1, %c0_2] : memref<128x128xf32, #tpu.memory_space<vmem>>, vector<128x128xf32>
    %cst = arith.constant dense<0.000000e+00> : vector<8x128xf32>
    %2 = tpu.matmul %0, %1, %cst {dimension_numbers = #tpu.dot_dimension_numbers<[1], [0], [0], [1], [0, 0, 1, 1], [], []>} : vector<8x128xf32>, vector<128x128xf32>, vector<8x128xf32> -> vector<8x128xf32>
    %c0_3 = arith.constant 0 : index
    %c0_4 = arith.constant 0 : index
    %3 = vector.load %arg3[%c0_3, %c0_4] : memref<1x128xf32, #tpu.memory_space<vmem>>, vector<1x128xf32>
    %4 = vector.broadcast %3 : vector<1x128xf32> to vector<8x128xf32>
    %5 = arith.addf %2, %4 : vector<8x128xf32>
    %cst_5 = arith.constant 0.000000e+00 : f32
    %6 = vector.broadcast %cst_5 : f32 to vector<8x128xf32>
    %7 = arith.maximumf %5, %6 : vector<8x128xf32>
    %c0_6 = arith.constant 0 : index
    %c0_7 = arith.constant 0 : index
    %8 = vector.load %arg4[%c0_6, %c0_7] : memref<128x256xf32, #tpu.memory_space<vmem>>, vector<128x256xf32>
    %cst_8 = arith.constant dense<0.000000e+00> : vector<8x256xf32>
    %9 = tpu.matmul %7, %8, %cst_8 {dimension_numbers = #tpu.dot_dimension_numbers<[1], [0], [0], [1], [0, 0, 1, 1], [], []>} : vector<8x128xf32>, vector<128x256xf32>, vector<8x256xf32> -> vector<8x256xf32>
    %c0_9 = arith.constant 0 : index
    %c0_10 = arith.constant 0 : index
    %10 = vector.load %arg5[%c0_9, %c0_10] : memref<1x256xf32, #tpu.memory_space<vmem>>, vector<1x256xf32>
    %11 = vector.broadcast %10 : vector<1x256xf32> to vector<8x256xf32>
    %12 = arith.addf %9, %11 : vector<8x256xf32>
    %cst_11 = arith.constant dense<0xFF800000> : vector<8xf32>
    %13 = vector.multi_reduction <maximumf>, %12, %cst_11 [1] : vector<8x256xf32> to vector<8xf32>
    %14 = vector.shape_cast %13 : vector<8xf32> to vector<8x1xf32>
    %15 = vector.broadcast %14 : vector<8x1xf32> to vector<8x256xf32>
    %16 = arith.subf %12, %15 : vector<8x256xf32>
    %17 = math.exp %16 : vector<8x256xf32>
    %cst_12 = arith.constant dense<0.000000e+00> : vector<8xf32>
    %18 = vector.multi_reduction <add>, %17, %cst_12 [1] : vector<8x256xf32> to vector<8xf32>
    %19 = vector.shape_cast %18 : vector<8xf32> to vector<8x1xf32>
    %20 = tpu.reciprocal %19 {approx = true} : vector<8x1xf32> -> vector<8x1xf32>
    %21 = arith.mulf %19, %20 : vector<8x1xf32>
    %cst_13 = arith.constant 2.000000e+00 : f32
    %22 = vector.broadcast %cst_13 : f32 to vector<8x1xf32>
    %23 = arith.subf %22, %21 : vector<8x1xf32>
    %24 = arith.mulf %20, %23 : vector<8x1xf32>
    %25 = vector.broadcast %24 : vector<8x1xf32> to vector<8x256xf32>
    %26 = arith.mulf %17, %25 : vector<8x256xf32>
    %c0_14 = arith.constant 0 : index
    %c0_15 = arith.constant 0 : index
    %27 = vector.load %arg6[%c0_14, %c0_15] : memref<8x256xf32, #tpu.memory_space<vmem>>, vector<8x256xf32>
    tpu.vector_store %arg6[%c0_14, %c0_15], %26 {strides = array<i32>} : memref<8x256xf32, #tpu.memory_space<vmem>>, vector<8x256xf32>,
    return
  }
  func.func @transform_0(%arg0: i32) -> (i32, i32) {
    %c0_i32 = arith.constant 0 : i32
    %c0_i32_0 = arith.constant 0 : i32
    return %arg0, %c0_i32 : i32, i32
  }
  func.func @transform_1(%arg0: i32) -> (i32, i32) {
    %c0_i32 = arith.constant 0 : i32
    %c0_i32_0 = arith.constant 0 : i32
    %c0_i32_1 = arith.constant 0 : i32
    return %c0_i32, %c0_i32_0 : i32, i32
  }
  func.func @transform_2(%arg0: i32) -> (i32, i32) {
    %c0_i32 = arith.constant 0 : i32
    %c0_i32_0 = arith.constant 0 : i32
    %c0_i32_1 = arith.constant 0 : i32
    return %c0_i32, %c0_i32_0 : i32, i32
  }
  func.func @transform_3(%arg0: i32) -> (i32, i32) {
    %c0_i32 = arith.constant 0 : i32
    %c0_i32_0 = arith.constant 0 : i32
    %c0_i32_1 = arith.constant 0 : i32
    return %c0_i32, %c0_i32_0 : i32, i32
  }
  func.func @transform_4(%arg0: i32) -> (i32, i32) {
    %c0_i32 = arith.constant 0 : i32
    %c0_i32_0 = arith.constant 0 : i32
    %c0_i32_1 = arith.constant 0 : i32
    return %c0_i32, %c0_i32_0 : i32, i32
  }
  func.func @transform_5(%arg0: i32) -> (i32, i32) {
    %c0_i32 = arith.constant 0 : i32
    %c0_i32_0 = arith.constant 0 : i32
    return %arg0, %c0_i32 : i32, i32
  }
}

</mosaic_0001>

<bundles_post_ra>
// kernel: tpu_custom_call.1
= control target key start
LH: loop header
LB: loop body
LE: loop exit
PB: predicated region body
PF: predicated region fallthrough
CT: control target
= control target key end

     0   :  { %10 = vsyncpa [#allocation3], 0  ;;  %s629_s0 = inlined_call_operand.hbm [shape: f32[8,128], index: 0, kind: input, shape index: {}]   ;;  %s630_s1 = inlined_call_operand.hbm [shape: f32[128,128], index: 1, kind: input, shape index: {}]   ;;  %s631_s2 = inlined_call_operand.vmem [shape: f32[1,128], index: 2, kind: input, shape index: {}]   ;;  %s632_s3 = inlined_call_operand.hbm [shape: f32[128,256], index: 3, kind: input, shape index: {}]   ;;  %s633_s4 = inlined_call_operand.vmem [shape: f32[1,256], index: 4, kind: input, shape index: {}]   ;;  %s634_s5 = inlined_call_operand.hbm [shape: f32[8,256], index: 5, kind: output, shape index: {}]  }
   0x1   :  { %11 = vsyncpa [#allocation6], 0 }
   0x2   :  { %12 = vsyncpa [#allocation4], 0  ;;  %s526_s18 = smov [#allocation5]   ;;  %s432_s22 = scalar_lea.hbm %s630_s1, 2048 }
   0x3   :  { %s28_s19 = sshll.u32 %s526_s18, 4  ;;  %p433_p0 = scmp.ne.s32.totalorder %s630_s1, %s432_s22  ;;  %s29_s19 = int_to_ptr.vmem [resolvable:$true] %s28_s19 }
   0x4   :  { %p436_p1 = scmp.lt.u32.totalorder %s432_s22, %s630_s1 }
   0x6   :  { %p438_p2 = pnand %p436_p1, %p433_p0 }
   0x8   :  { %441 = shalt.err (!%p438_p2)
}
   0x9   :  { %s442_s27 = scalar_lea.vmem %s29_s19, 2048  ;;  %p447_p4 = scmp.lt.s32.totalorder %s29_s19, %s29_s19 }
   0xa   :  { %p443_p3 = scmp.ne.s32.totalorder %s29_s19, %s442_s27  ;;  %p448_p5 = scmp.lt.s32.totalorder %s442_s27, %s442_s27 }
   0xc   :  { %p449_p6 = por %p448_p5, %p447_p4 }
   0xe   :  { %p450_p7 = pnand %p449_p6, %p443_p3 }
  0x10   :  { %453 = shalt.err (!%p450_p7)
}
  0x11   :  { %s527_s28 = smov 128   ;;  %s528_s29 = smov 8  }
  0x12   :  { %34 = dma.hbm_to_vmem [thread:$0]  %s630_s1, 2048, %s29_s19, [#allocation6], %s527_s28, %s527_s28, %s528_s29  }
  0x13   :  { %s529_s7 = smov [#allocation2]   ;;  %s530_s9 = smov [#allocation7]  }
  0x14   :  { %s19_s8 = sshll.u32 %s529_s7, 4  ;;  %s42_s10 = sshll.u32 %s530_s9, 4  ;;  %s20_s8 = int_to_ptr.vmem [resolvable:$true] %s19_s8  ;;  %s43_s10 = int_to_ptr.vmem [resolvable:$true] %s42_s10 }
  0x15   :  { %s454_s13 = scalar_lea.hbm %s629_s0, 128 }
  0x16   :  { %p455_p8 = scmp.ne.s32.totalorder %s629_s0, %s454_s13  ;;  %p458_p9 = scmp.lt.u32.totalorder %s454_s13, %s629_s0 }
  0x18   :  { %p460_p10 = pnand %p458_p9, %p455_p8 }
  0x1a   :  { %463 = shalt.err (!%p460_p10)
}
  0x1b   :  { %s464_s1 = scalar_lea.vmem %s20_s8, 128  ;;  %p469_p12 = scmp.lt.s32.totalorder %s20_s8, %s20_s8 }
  0x1c   :  { %p465_p11 = scmp.ne.s32.totalorder %s20_s8, %s464_s1  ;;  %p470_p13 = scmp.lt.s32.totalorder %s464_s1, %s464_s1 }
  0x1e   :  { %p471_p0 = por %p470_p13, %p469_p12 }
  0x20   :  { %p472_p1 = pnand %p471_p0, %p465_p11 }
  0x22   :  { %475 = shalt.err (!%p472_p1)
}
  0x23   :  { %22 = dma.hbm_to_vmem [thread:$0]  %s629_s0, 128, %s20_s8, [#allocation3]  }
  0x24   :  { %s476_s22 = scalar_lea.hbm %s632_s3, 4096 }
  0x25   :  { %p477_p2 = scmp.ne.s32.totalorder %s632_s3, %s476_s22  ;;  %p480_p3 = scmp.lt.u32.totalorder %s476_s22, %s632_s3 }
  0x27   :  { %p482_p4 = pnand %p480_p3, %p477_p2 }
  0x29   :  { %485 = shalt.err (!%p482_p4)
}
  0x2a   :  { %s486_s27 = scalar_lea.vmem %s43_s10, 4096  ;;  %p491_p6 = scmp.lt.s32.totalorder %s43_s10, %s43_s10 }
  0x2b   :  { %p487_p5 = scmp.ne.s32.totalorder %s43_s10, %s486_s27  ;;  %p492_p7 = scmp.lt.s32.totalorder %s486_s27, %s486_s27 }
  0x2d   :  { %p493_p8 = por %p492_p7, %p491_p6 }
  0x2f   :  { %p494_p9 = pnand %p493_p8, %p487_p5 }
  0x31   :  { %497 = shalt.err (!%p494_p9)
}
  0x32   :  { %s531_s0 = smov 256   ;;  %s532_s28 = smov 16  }
  0x33   :  { %48 = dma.hbm_to_vmem [thread:$0]  %s632_s3, 4096, %s43_s10, [#allocation6], %s531_s0, %s531_s0, %s532_s28  }
  0x34   :  { %520 = dma.done.wait [#allocation3], 128  }
  0x35   :  { %521 = vsyncadd [#allocation3], 4294967168 }
  0x36   :  { %522 = dma.done.wait [#allocation6], 6144  }
  0x37   :  { %523 = vsyncadd [#allocation6], 4294961152  ;;  %v533_v0 = vmov 0.0|0.0   ;;  %vm534_vm0 = vmmov 0   ;;  %v535_v1 = vmov 0.0   ;;  %v61_v2 = vld [vmem:[#allocation5] sm:$0xff] }
  0x38   :  { %359 = vmatprep.subr.bf16.mxu0 %v533_v0  ;;  %356 = vmatprep.mubr.msk.f32.mxu0 %vm534_vm0, %v535_v1  ;;  %v62_v3 = vld [vmem:[#allocation5 + $0x8] sm:$0xff]  ;;  %v63_v4 = vld [vmem:[#allocation5 + $0x10] sm:$0xff]  ;;  %v64_v6 = vld [vmem:[#allocation5 + $0x18] sm:$0xff] }
  0x39   :  { %263 = vmatprep.mubr.f32.mxu1 %v535_v1  ;;  %v360_v5 = vpack.c.bf16 %v62_v3, %v61_v2  ;;  %v363_v7 = vpack.c.bf16 %v64_v6, %v63_v4  ;;  %v65_v8 = vld [vmem:[#allocation5 + $0x20] sm:$0xff]  ;;  %v66_v9 = vld [vmem:[#allocation5 + $0x28] sm:$0xff]  ;;  %v67_v11 = vld [vmem:[#allocation5 + $0x30] sm:$0xff] }
  0x3a   :  { %v156_v10 = vld [vmem:[#allocation7 + $0x8] sm:$0xff]  ;;  %v68_v12 = vld [vmem:[#allocation5 + $0x38] sm:$0xff]  ;;  %v155_v14 = vld [vmem:[#allocation7] sm:$0xff]  ;;  %v366_v16 = vpack.c.bf16 %v66_v9, %v65_v8 }
  0x3b   :  { %361 = vmatpush3.bf16.msra.mxu0 %v360_v5  ;;  %v158_v13 = vld [vmem:[#allocation7 + $0x18] sm:$0xff]  ;;  %v157_v15 = vld [vmem:[#allocation7 + $0x10] sm:$0xff]  ;;  %v160_v19 = vld [vmem:[#allocation7 + $0x28] sm:$0xff]  ;;  %v369_v27 = vpack.c.bf16 %v68_v12, %v67_v11 }
  0x3c   :  { %362 = vmatprep.subr.bf16.mxu0 %v533_v0  ;;  %v383_v17 = vpack.c.bf16 %v158_v13, %v156_v10  ;;  %v385_v18 = vpack.c.bf16 %v157_v15, %v155_v14  ;;  %v162_v20 = vld [vmem:[#allocation7 + $0x38] sm:$0xff]  ;;  %v159_v21 = vld [vmem:[#allocation7 + $0x20] sm:$0xff]  ;;  %v161_v23 = vld [vmem:[#allocation7 + $0x30] sm:$0xff] }
  0x3d   :  { %v387_v22 = vpack.c.bf16 %v162_v20, %v160_v19  ;;  %v164_v24 = vld [vmem:[#allocation7 + $0x48] sm:$0xff]  ;;  %v166_v25 = vld [vmem:[#allocation7 + $0x58] sm:$0xff]  ;;  %v389_v26 = vpack.c.bf16 %v161_v23, %v159_v21  ;;  %v69_v28 = vld [vmem:[#allocation5 + $0x40] sm:$0xff] }
  0x3e   :  { %384 = vmatprep.subr.bf16.mxu1 %v383_v17  ;;  %v391_v29 = vpack.c.bf16 %v166_v25, %v164_v24  ;;  %v163_v30 = vld [vmem:[#allocation7 + $0x40] sm:$0xff]  ;;  %v165_v31 = vld [vmem:[#allocation7 + $0x50] sm:$0xff]  ;;  %v70_v32 = vld [vmem:[#allocation5 + $0x48] sm:$0xff] }
  0x3f   :  { %364 = vmatpush3.bf16.msra.mxu0 %v363_v7  ;;  %386 = vmatpush1.bf16.msra.mxu1 %v385_v18  ;;  %v168_v33 = vld [vmem:[#allocation7 + $0x68] sm:$0xff]  ;;  %v170_v34 = vld [vmem:[#allocation7 + $0x78] sm:$0xff]  ;;  %v393_v35 = vpack.c.bf16 %v165_v31, %v163_v30  ;;  %v372_v36 = vpack.c.bf16 %v70_v32, %v69_v28  ;;  %v71_v37 = vld [vmem:[#allocation5 + $0x50] sm:$0xff] }
  0x40   :  { %365 = vmatprep.subr.bf16.mxu0 %v533_v0  ;;  %388 = vmatprep.subr.bf16.mxu1 %v387_v22  ;;  %v395_v38 = vpack.c.bf16 %v170_v34, %v168_v33  ;;  %v167_v39 = vld [vmem:[#allocation7 + $0x60] sm:$0xff]  ;;  %v169_v40 = vld [vmem:[#allocation7 + $0x70] sm:$0xff]  ;;  %v72_v41 = vld [vmem:[#allocation5 + $0x58] sm:$0xff] }
  0x41   :  { %v172_v42 = vld [vmem:[#allocation7 + $0x88] sm:$0xff]  ;;  %v174_v43 = vld [vmem:[#allocation7 + $0x98] sm:$0xff]  ;;  %v397_v44 = vpack.c.bf16 %v169_v40, %v167_v39  ;;  %v375_v45 = vpack.c.bf16 %v72_v41, %v71_v37  ;;  %v73_v46 = vld [vmem:[#allocation5 + $0x60] sm:$0xff] }
  0x42   :  { %v399_v47 = vpack.c.bf16 %v174_v43, %v172_v42  ;;  %v171_v48 = vld [vmem:[#allocation7 + $0x80] sm:$0xff]  ;;  %v173_v49 = vld [vmem:[#allocation7 + $0x90] sm:$0xff]  ;;  %v74_v50 = vld [vmem:[#allocation5 + $0x68] sm:$0xff] }
  0x43   :  { %367 = vmatpush3.bf16.msra.mxu0 %v366_v16  ;;  %390 = vmatpush1.bf16.msra.mxu1 %v389_v26  ;;  %v176_v51 = vld [vmem:[#allocation7 + $0xa8] sm:$0xff]  ;;  %v178_v52 = vld [vmem:[#allocation7 + $0xb8] sm:$0xff]  ;;  %v401_v53 = vpack.c.bf16 %v173_v49, %v171_v48  ;;  %v378_v54 = vpack.c.bf16 %v74_v50, %v73_v46  ;;  %v75_v55 = vld [vmem:[#allocation5 + $0x70] sm:$0xff]  ;;  %v189_v16 = vlaneseq }
  0x44   :  { %368 = vmatprep.subr.bf16.mxu0 %v533_v0  ;;  %392 = vmatprep.subr.bf16.mxu1 %v391_v29  ;;  %v403_v56 = vpack.c.bf16 %v178_v52, %v176_v51  ;;  %v175_v57 = vld [vmem:[#allocation7 + $0xa0] sm:$0xff]  ;;  %v177_v58 = vld [vmem:[#allocation7 + $0xb0] sm:$0xff]  ;;  %v76_v59 = vld [vmem:[#allocation5 + $0x78] sm:$0xff] }
  0x45   :  { %v180_v60 = vld [vmem:[#allocation7 + $0xc8] sm:$0xff]  ;;  %v182_v61 = vld [vmem:[#allocation7 + $0xd8] sm:$0xff]  ;;  %v405_v62 = vpack.c.bf16 %v177_v58, %v175_v57  ;;  %v381_v63 = vpack.c.bf16 %v76_v59, %v75_v55  ;;  %v179_v2 = vld [vmem:[#allocation7 + $0xc0] sm:$0xff]  ;;  %v190_v17 = vshrl.u32 %v189_v16, 7 }
  0x46   :  { %v407_v1 = vpack.c.bf16 %v182_v61, %v180_v60  ;;  %v181_v3 = vld [vmem:[#allocation7 + $0xd0] sm:$0xff]  ;;  %v60_v5 = vld [vmem:[#allocation2] sm:$0xff]  ;;  %v184_v6 = vld [vmem:[#allocation7 + $0xe8] sm:$0xff] }
  0x47   :  { %370 = vmatpush3.bf16.msra.mxu0 %v369_v27  ;;  %394 = vmatpush1.bf16.msra.mxu1 %v393_v35  ;;  %v409_v4 = vpack.c.bf16 %v181_v3, %v179_v2  ;;  %v186_v7 = vld [vmem:[#allocation7 + $0xf8] sm:$0xff]  ;;  %v183_v9 = vld [vmem:[#allocation7 + $0xe0] sm:$0xff]  ;;  %v185_v10 = vld [vmem:[#allocation7 + $0xf0] sm:$0xff]  ;;  %v191_v18 = vsub.s32 0, %v190_v17  ;;  %v195_v20 = vsub.s32 1, %v190_v17 }
  0x48   :  { %371 = vmatprep.subr.bf16.mxu0 %v533_v0  ;;  %396 = vmatprep.subr.bf16.mxu1 %v395_v38  ;;  %v411_v8 = vpack.c.bf16 %v186_v7, %v184_v6  ;;  %v413_v11 = vpack.c.bf16 %v185_v10, %v183_v9  ;;  %v306_v12 = vld [vmem:[%s631_s2] ss:$0 sm:$0xff]  ;;  %s536_s2 = smov [#allocation8]  }
  0x49   :  { %v187_v19 = vld [vmem:[%s633_s4] sm:$0x3]  ;;  %s296_s4 = sshll.u32 %s536_s2, 4  ;;  %s297_s4 = int_to_ptr.vmem [resolvable:$true] %s296_s4 }
  0x4a   :  { %v192_v21 = vrot.slane %v187_v19, %v191_v18  ;;  %v196_v22 = vrot.slane %v187_v19, %v195_v20  ;;  %s498_s9 = scalar_lea.vmem %s297_s4, 256  ;;  %p503_p11 = scmp.lt.s32.totalorder %s297_s4, %s297_s4 }
  0x4b   :  { %373 = vmatpush3.bf16.msra.mxu0 %v372_v36  ;;  %398 = vmatpush1.bf16.msra.mxu1 %v397_v44  ;;  %p499_p10 = scmp.ne.s32.totalorder %s297_s4, %s498_s9  ;;  %p504_p12 = scmp.lt.s32.totalorder %s498_s9, %s498_s9 }
  0x4c   :  { %374 = vmatprep.subr.bf16.mxu0 %v533_v0  ;;  %400 = vmatprep.subr.bf16.mxu1 %v399_v47 }
  0x4d   :  { %p505_p13 = por %p504_p12, %p503_p11 }
  0x4f   :  { %376 = vmatpush3.bf16.msra.mxu0 %v375_v45  ;;  %402 = vmatpush1.bf16.msra.mxu1 %v401_v53  ;;  %p506_p0 = pnand %p505_p13, %p499_p10 }
  0x50   :  { %377 = vmatprep.subr.bf16.mxu0 %v533_v0  ;;  %404 = vmatprep.subr.bf16.mxu1 %v403_v56 }
  0x53   :  { %379 = vmatpush3.bf16.msra.mxu0 %v378_v54  ;;  %406 = vmatpush1.bf16.msra.mxu1 %v405_v62 }
  0x54   :  { %380 = vmatprep.subr.bf16.mxu0 %v533_v0  ;;  %408 = vmatprep.subr.bf16.mxu1 %v407_v1 }
  0x57   :  { %382 = vmatpush3.bf16.msra.mxu0 %v381_v63  ;;  %410 = vmatpush1.bf16.msra.mxu1 %v409_v4 }
  0x58   :  { %412 = vmatprep.subr.bf16.mxu1 %v411_v8 }
  0x5a   :  { %357 = vmatmul.mubr.f32.vlgmr.msra.gmra.mrb[0].mxu0 %v60_v5 }
  0x5b   :  { %414 = vmatpush1.bf16.msra.mxu1 %v413_v11 }
 0x12d   :  { %v150_v0 = vpop.f32.mrb[0].mxu0 }
 0x12e   :  { %v151_v13 = vadd.f32 %v306_v12, %v150_v0  ;;  %v358_v14 = vpop.f32.mrb[1].mxu0 }
 0x130   :  { %v154_v15 = vmax.f32 %v151_v13, 0.0 }
 0x132   :  { %264 = vmatmul.mubr.f32.vlgmr.msra.gmra.mrb[0].mxu1 %v154_v15 }
 0x205   :  { %v265_v23 = vpop.f32.mrb[0].mxu1 }
 0x206   :  { %v266_v24 = vadd.f32 %v265_v23, %v192_v21  ;;  %v267_v25 = vpop.f32.mrb[1].mxu1 }
 0x207   :  { %v268_v26 = vadd.f32 %v267_v25, %v196_v22 }
 0x209   :  { %v270_v27 = vmax.f32 %v266_v24, %v268_v26 }
 0x20b   :  { %271 = vmax.xlane.f32.xlu0 %v270_v27 }
 0x298   :  { %v272_v28 = vpop.xlane.xlu0 %271 }
 0x299   :  { %v273_v29 = vsub.f32 %v266_v24, %v272_v28  ;;  %v274_v30 = vsub.f32 %v268_v26, %v272_v28 }
 0x29b   :  { %v275_v31 = vmul.f32 1.442695, %v273_v29  ;;  %v277_v32 = vmul.f32 1.442695, %v274_v30 }
 0x29d   :  { %426 = vpow2.f32 %v275_v31 }
 0x29e   :  { %428 = vpow2.f32 %v277_v32 }
 0x2a7   :  { %v427_v33 = vpop.eup %426 }
 0x2a8   :  { %v429_v34 = vpop.eup %428 }
 0x2a9   :  { %v279_v35 = vadd.f32 %v429_v34, %v427_v33 }
 0x2ab   :  { %280 = vadd.xlane.f32.xlu0 %v279_v35 }
 0x338   :  { %v281_v36 = vpop.xlane.xlu0 %280 }
 0x339   :  { %430 = vrcp.f32 %v281_v36 }
 0x343   :  { %v431_v37 = vpop.eup %430 }
 0x344   :  { %v283_v38 = vmul.f32 %v431_v37, %v281_v36 }
 0x346   :  { %v284_v39 = vsub.f32 2.0, %v283_v38 }
 0x348   :  { %v285_v40 = vmul.f32 %v431_v37, %v284_v39 }
 0x34a   :  { %v286_v41 = vmul.f32 %v427_v33, %v285_v40  ;;  %v287_v42 = vmul.f32 %v429_v34, %v285_v40 }
 0x34c   :  { %288 = vst [vmem:[#allocation8] sm:$0xff] %v286_v41  ;;  %289 = vst [vmem:[#allocation8 + $0x8] sm:$0xff] %v287_v42 }
 0x34d   :  { %509 = shalt.err (!%p506_p0)
}
 0x34e   :  { %s510_s12 = scalar_lea.hbm %s634_s5, 256 }
 0x34f   :  { %p511_p1 = scmp.ne.s32.totalorder %s634_s5, %s510_s12  ;;  %p514_p2 = scmp.lt.u32.totalorder %s510_s12, %s634_s5 }
 0x351   :  { %p516_p3 = pnand %p514_p2, %p511_p1 }
 0x353   :  { %519 = shalt.err (!%p516_p3)
}
 0x354   :  { %299 = dma.vmem_to_hbm [thread:$0]  %s297_s4, 256, %s634_s5, [#allocation4]  }
 0x355   :  { %524 = dma.done.wait [#allocation4], 256  }
 0x356   :  { %525 = vsyncadd [#allocation4], 4294967040 }
 0x357   :  { %303 = vsyncpa [#allocation3], 1 }
 0x358   :  { %304 = vsyncpa [#allocation6], 1 }
 0x359   :  { %305 = vsyncpa [#allocation4], 1 }

</bundles_post_ra>
